<compile_context>
chip_gen: v6e
topology: v6e:2x2x1
jax: 0.10.0
libtpu: 0.0.40
codegen_flags: <defaults>
</compile_context>

<pallas_src>
import functools

import numpy as np
import jax
import jax.numpy as jnp
from jax import lax
from jax.experimental import pallas as pl
from jax.experimental.pallas import tpu as pltpu


def _round_up(x, m):
    return (x + m - 1) // m * m


def _clip_head_kernel(scale_ref, mvrec_ref, text_ref,
                      logits_ref, pred_ref, emb_ref, acc_ref,
                      *, n_true, k_true, tn, mask_tail):
    """mvrec_ref: [TB, TN, C] (native dtype) VMEM slab,
    text_ref: [C, Kp] bf16 (pre-normalized, pre-transposed),
    scale_ref: [1] f32 SMEM, acc_ref: [TB, C] f32 scratch accumulator."""
    k = pl.program_id(1)
    last = pl.num_programs(1) - 1

    @pl.when(k == 0)
    def _():
        acc_ref[...] = jnp.zeros_like(acc_ref)

    def _accumulate(apply_mask):
        # Upcast in VMEM (keeps HBM bytes at native width); pure load+add per
        # step, hidden under the next slab's DMA.
        slab = mvrec_ref[...].astype(jnp.float32)            # [TB, TN, C]
        if apply_mask:
            n_idx = lax.broadcasted_iota(jnp.int32, slab.shape, 1)
            slab = jnp.where(n_idx + k * tn < n_true, slab, 0.0)
        acc_ref[...] += jnp.sum(slab, axis=1)

    if mask_tail:
        @pl.when(k != last)
        def _():
            _accumulate(False)

        @pl.when(k == last)
        def _():
            _accumulate(True)
    else:
        _accumulate(False)

    @pl.when(k == last)
    def _():
        # assemble_on_embed: mean over the true (unpadded) N
        emb = acc_ref[...] * jnp.float32(1.0 / n_true)        # [TB, C]
        emb_ref[...] = emb.astype(emb_ref.dtype)

        # ClipZeroShot head: logit_scale * cosine similarity (eps keeps
        # garbage / empty rows finite; they are dropped outside anyway)
        emb_n = emb * lax.rsqrt(
            jnp.sum(emb * emb, axis=-1, keepdims=True) + 1e-12)
        logits = scale_ref[0] * jnp.dot(
            emb_n.astype(jnp.bfloat16), text_ref[...],
            preferred_element_type=jnp.float32)               # [TB, Kp]
        logits_ref[...] = logits

        # softmax over the true classes only (padded lanes masked out);
        # exact denominator — finalize runs once per batch tile, so it's free.
        col = lax.broadcasted_iota(jnp.int32, logits.shape, 1)
        masked = jnp.where(col < k_true, logits, -jnp.inf)
        m = jnp.max(masked, axis=-1, keepdims=True)
        e = jnp.exp(masked - m)
        pred_ref[...] = e / jnp.sum(e, axis=-1, keepdims=True)


def clip_model_forward(mvrec, text_features, logit_scale, *, tb=128):
    """mvrec: [B, V, L, C] (f32 or bf16), text_features: [K, C], logit_scale scalar."""
    B, V, L, C = mvrec.shape
    K = text_features.shape[0]
    N = V * L

    # merge_second_third_dims — metadata-only reshape, native dtype, no pad.
    x = mvrec.reshape(B, N, C)
    itemsize = int(jnp.dtype(x.dtype).itemsize)
    Kp = _round_up(K, 128)

    # ---- batch tile -------------------------------------------------------
    if B <= 8:
        TB = B                                   # full-dim block (always legal)
    elif B <= tb:
        TB = _round_up(-(-B // 2), 8)            # >=2 parallel tiles (v7x 2 TCs)
    else:
        TB = tb                                  # 128 rows: fills the MXU M dim
    Bt = pl.cdiv(B, TB)

    # ---- slab sizing from the chip's actual VMEM --------------------------
    try:
        vmem_cap = int(pltpu.get_tpu_info().vmem_capacity_bytes)
    except Exception:
        vmem_cap = 64 * 1024 * 1024              # conservative (v7x per-TC)

    text_bytes = C * Kp * 2                                   # bf16 [C, Kp]
    out_bytes = TB * Kp * 4 * 2 + TB * C * 4                  # logits+pred+emb tiles
    fixed = 2 * text_bytes + 2 * out_bytes + TB * C * 4 + (2 << 20)
    slab_budget = max((int(vmem_cap * 0.8) - fixed) // 2, 2 << 20)

    tn_cap = max(8, (slab_budget // (TB * C * itemsize)) // 8 * 8)
    if N % 8 == 0:
        TN = min(tn_cap, N)
    elif tn_cap >= N:
        TN = N                                   # full-dim block (always legal)
    else:
        TN = tn_cap
    Nk = pl.cdiv(N, TN)
    mask_tail = (N % TN) != 0

    # ---- text preprocessing hoisted out of the kernel ----------------------
    txt = text_features.astype(jnp.float32)
    txt = txt / jnp.linalg.norm(txt, axis=-1, keepdims=True)
    txt = jnp.pad(txt.T.astype(jnp.bfloat16), ((0, 0), (0, Kp - K)))  # [C, Kp]

    scale = jnp.asarray(logit_scale, jnp.float32).reshape(1)

    usage = 2 * TB * TN * C * itemsize + fixed + (4 << 20)
    vmem_limit = int(min(max(usage, 32 << 20), int(vmem_cap * 0.95)))

    kernel = functools.partial(_clip_head_kernel, n_true=N, k_true=K,
                               tn=TN, mask_tail=mask_tail)

    grid_spec = pltpu.PrefetchScalarGridSpec(
        num_scalar_prefetch=0,
        grid=(Bt, Nk),
        in_specs=[
            pl.BlockSpec(memory_space=pltpu.MemorySpace.SMEM),        # logit_scale
            pl.BlockSpec((TB, TN, C), lambda i, k: (i, k, 0)),        # mvrec slab
            pl.BlockSpec((C, Kp), lambda i, k: (0, 0)),               # text [C,Kp] bf16
        ],
        out_specs=(
            pl.BlockSpec((TB, Kp), lambda i, k: (i, 0)),              # logits
            pl.BlockSpec((TB, Kp), lambda i, k: (i, 0)),              # predicts
            pl.BlockSpec((TB, C), lambda i, k: (i, 0)),               # embeddings
        ),
        scratch_shapes=[pltpu.VMEM((TB, C), jnp.float32)],            # emb accumulator
    )

    logits_p, pred_p, emb = pl.pallas_call(
        kernel,
        out_shape=(
            jax.ShapeDtypeStruct((B, Kp), jnp.float32),
            jax.ShapeDtypeStruct((B, Kp), jnp.float32),
            jax.ShapeDtypeStruct((B, C), jnp.float32),
        ),
        grid_spec=grid_spec,
        compiler_params=pltpu.CompilerParams(
            dimension_semantics=("parallel", "arbitrary"),
            vmem_limit_bytes=vmem_limit),
    )(scale, x, txt)

    return {
        "logits": logits_p[:, :K],
        "predicts": pred_p[:, :K],
        "embeddings": emb,
    }


def _reference_forward(mvrec, text_features, logit_scale):
    B, V, L, C = mvrec.shape
    x = mvrec.reshape(B, V * L, C)
    emb = x.mean(axis=1)
    emb_n = emb / np.linalg.norm(emb, axis=-1, keepdims=True)
    txt_n = text_features / np.linalg.norm(text_features, axis=-1, keepdims=True)
    logits = logit_scale * emb_n @ txt_n.T
    e = np.exp(logits - logits.max(-1, keepdims=True))
    predicts = e / e.sum(-1, keepdims=True)
    return logits, predicts, emb


if __name__ == "__main__":
    # small shapes consistent with the forward:
    # batch=2 images, 2 views, 4 tokens/view, 32-d CLIP embedding, 8 text classes
    B, V, L, C, K = 2, 2, 4, 32, 8
    key = jax.random.PRNGKey(0)
    k1, k2 = jax.random.split(key)
    mvrec = jax.random.normal(k1, (B, V, L, C), jnp.float32)
    text_features = jax.random.normal(k2, (K, C), jnp.float32)
    logit_scale = float(np.exp(np.log(1.0 / 0.07)))  # CLIP default, exp'd

    out = clip_model_forward(mvrec, text_features, logit_scale)
    jax.block_until_ready(out)

    ref_logits, ref_pred, ref_emb = _reference_forward(
        np.asarray(mvrec), np.asarray(text_features), logit_scale)
    # bf16 MXU operands -> loosened logits/predicts tolerances (f32 reference)
    np.testing.assert_allclose(np.asarray(out["logits"]), ref_logits,
                               rtol=2e-2, atol=1e-1)
    np.testing.assert_allclose(np.asarray(out["predicts"]), ref_pred,
                               rtol=5e-2, atol=2e-2)
    np.testing.assert_allclose(np.asarray(out["embeddings"]), ref_emb,
                               rtol=1e-5, atol=1e-5)
    assert np.allclose(np.asarray(out["predicts"]).sum(-1), 1.0, atol=1e-3)
    print("KERNEL_OK")
</pallas_src>

<mosaic_0001>
module attributes {stable_mosaic.version = 11 : i64} {
  func.func @_clip_head_kernel(%arg0: i32, %arg1: i32, %arg2: memref<1xf32, #tpu.memory_space<smem>>, %arg3: memref<2x8x32xf32, #tpu.memory_space<vmem>>, %arg4: memref<32x128xbf16, #tpu.memory_space<vmem>>, %arg5: memref<2x128xf32, #tpu.memory_space<vmem>>, %arg6: memref<2x128xf32, #tpu.memory_space<vmem>>, %arg7: memref<2x32xf32, #tpu.memory_space<vmem>>, %arg8: memref<2x32xf32, #tpu.memory_space<vmem>>) attributes {dimension_semantics = [#tpu.dimension_semantics<parallel>, #tpu.dimension_semantics<arbitrary>], iteration_bounds = array<i64: 1, 1>, scalar_prefetch = 0 : i64, scratch_operands = 1 : i64, tpu.core_type = #tpu.core_type<tc>, window_params = [{transform_indices = @transform_0, window_bounds = array<i64: 1>}, {transform_indices = @transform_1, window_bounds = array<i64: 2, 8, 32>}, {pipeline_mode = #tpu.pipeline_mode<synchronous>, transform_indices = @transform_2, window_bounds = array<i64: 32, 128>}, {transform_indices = @transform_3, window_bounds = array<i64: 2, 128>}, {transform_indices = @transform_4, window_bounds = array<i64: 2, 128>}, {transform_indices = @transform_5, window_bounds = array<i64: 2, 32>}]} {
    %c0_i32 = arith.constant 0 : i32
    %0 = arith.cmpi eq, %arg1, %c0_i32 : i32
    %1 = arith.extui %0 : i1 to i32
    %c0_i32_0 = arith.constant 0 : i32
    %2 = arith.cmpi ne, %1, %c0_i32_0 : i32
    scf.if %2 {
      %cst_9 = arith.constant 0.000000e+00 : f32
      %11 = vector.broadcast %cst_9 : f32 to vector<2x32xf32>
      %c0_10 = arith.constant 0 : index
      %c0_11 = arith.constant 0 : index
      %12 = vector.load %arg8[%c0_10, %c0_11] : memref<2x32xf32, #tpu.memory_space<vmem>>, vector<2x32xf32>
      tpu.vector_store %arg8[%c0_10, %c0_11], %11 {strides = array<i32>} : memref<2x32xf32, #tpu.memory_space<vmem>>, vector<2x32xf32>,
    } else {
    }
    %c0 = arith.constant 0 : index
    %c0_1 = arith.constant 0 : index
    %c0_2 = arith.constant 0 : index
    %3 = vector.load %arg3[%c0, %c0_1, %c0_2] : memref<2x8x32xf32, #tpu.memory_space<vmem>>, vector<2x8x32xf32>
    %c0_3 = arith.constant 0 : index
    %c0_4 = arith.constant 0 : index
    %4 = vector.load %arg8[%c0_3, %c0_4] : memref<2x32xf32, #tpu.memory_space<vmem>>, vector<2x32xf32>
    %cst = arith.constant dense<0.000000e+00> : vector<2x32xf32>
    %5 = vector.multi_reduction <add>, %3, %cst [1] : vector<2x8x32xf32> to vector<2x32xf32>
    %6 = arith.addf %4, %5 : vector<2x32xf32>
    %c0_5 = arith.constant 0 : index
    %c0_6 = arith.constant 0 : index
    %7 = vector.load %arg8[%c0_5, %c0_6] : memref<2x32xf32, #tpu.memory_space<vmem>>, vector<2x32xf32>
    tpu.vector_store %arg8[%c0_5, %c0_6], %6 {strides = array<i32>} : memref<2x32xf32, #tpu.memory_space<vmem>>, vector<2x32xf32>,
    %c0_i32_7 = arith.constant 0 : i32
    %8 = arith.cmpi eq, %arg1, %c0_i32_7 : i32
    %9 = arith.extui %8 : i1 to i32
    %c0_i32_8 = arith.constant 0 : i32
    %10 = arith.cmpi ne, %9, %c0_i32_8 : i32
    scf.if %10 {
      %c0_9 = arith.constant 0 : index
      %c0_10 = arith.constant 0 : index
      %11 = vector.load %arg8[%c0_9, %c0_10] : memref<2x32xf32, #tpu.memory_space<vmem>>, vector<2x32xf32>
      %cst_11 = arith.constant 1.250000e-01 : f32
      %12 = vector.broadcast %cst_11 : f32 to vector<2x32xf32>
      %13 = arith.mulf %11, %12 : vector<2x32xf32>
      %c0_12 = arith.constant 0 : index
      %c0_13 = arith.constant 0 : index
      %14 = vector.load %arg7[%c0_12, %c0_13] : memref<2x32xf32, #tpu.memory_space<vmem>>, vector<2x32xf32>
      tpu.vector_store %arg7[%c0_12, %c0_13], %13 {strides = array<i32>} : memref<2x32xf32, #tpu.memory_space<vmem>>, vector<2x32xf32>,
      %15 = arith.mulf %13, %13 : vector<2x32xf32>
      %cst_14 = arith.constant dense<0.000000e+00> : vector<2xf32>
      %16 = vector.multi_reduction <add>, %15, %cst_14 [1] : vector<2x32xf32> to vector<2xf32>
      %17 = vector.shape_cast %16 : vector<2xf32> to vector<2x1xf32>
      %cst_15 = arith.constant 9.99999996E-13 : f32
      %18 = vector.broadcast %cst_15 : f32 to vector<2x1xf32>
      %19 = arith.addf %17, %18 : vector<2x1xf32>
      %20 = math.rsqrt %19 : vector<2x1xf32>
      %21 = vector.broadcast %20 : vector<2x1xf32> to vector<2x32xf32>
      %22 = arith.mulf %13, %21 : vector<2x32xf32>
      %c0_16 = arith.constant 0 : index
      %23 = memref.load %arg2[%c0_16] : memref<1xf32, #tpu.memory_space<smem>>
      %24 = arith.truncf %22 : vector<2x32xf32> to vector<2x32xbf16>
      %c0_17 = arith.constant 0 : index
      %c0_18 = arith.constant 0 : index
      %25 = vector.load %arg4[%c0_17, %c0_18] : memref<32x128xbf16, #tpu.memory_space<vmem>>, vector<32x128xbf16>
      %cst_19 = arith.constant dense<0.000000e+00> : vector<2x128xf32>
      %26 = tpu.matmul %24, %25, %cst_19 {dimension_numbers = #tpu.dot_dimension_numbers<[1], [0], [0], [1], [0, 0, 1, 1], [], []>} : vector<2x32xbf16>, vector<32x128xbf16>, vector<2x128xf32> -> vector<2x128xf32>
      %27 = vector.broadcast %23 : f32 to vector<2x128xf32>
      %28 = arith.mulf %27, %26 : vector<2x128xf32>
      %c0_20 = arith.constant 0 : index
      %c0_21 = arith.constant 0 : index
      %29 = vector.load %arg5[%c0_20, %c0_21] : memref<2x128xf32, #tpu.memory_space<vmem>>, vector<2x128xf32>
      tpu.vector_store %arg5[%c0_20, %c0_21], %28 {strides = array<i32>} : memref<2x128xf32, #tpu.memory_space<vmem>>, vector<2x128xf32>,
      %30 = tpu.iota {dimensions = array<i32: 1>} : vector<2x128xi32>
      %c8_i32 = arith.constant 8 : i32
      %31 = vector.broadcast %c8_i32 : i32 to vector<2x128xi32>
      %32 = arith.cmpi slt, %30, %31 : vector<2x128xi32>
      %cst_22 = arith.constant 0xFF800000 : f32
      %33 = vector.broadcast %cst_22 : f32 to vector<2x128xf32>
      %34 = arith.select %32, %28, %33 : vector<2x128xi1>, vector<2x128xf32>
      %cst_23 = arith.constant dense<0xFF800000> : vector<2xf32>
      %35 = vector.multi_reduction <maximumf>, %34, %cst_23 [1] : vector<2x128xf32> to vector<2xf32>
      %36 = vector.shape_cast %35 : vector<2xf32> to vector<2x1xf32>
      %37 = vector.broadcast %36 : vector<2x1xf32> to vector<2x128xf32>
      %38 = arith.subf %34, %37 : vector<2x128xf32>
      %39 = math.exp %38 : vector<2x128xf32>
      %cst_24 = arith.constant dense<0.000000e+00> : vector<2xf32>
      %40 = vector.multi_reduction <add>, %39, %cst_24 [1] : vector<2x128xf32> to vector<2xf32>
      %41 = vector.shape_cast %40 : vector<2xf32> to vector<2x1xf32>
      %42 = vector.broadcast %41 : vector<2x1xf32> to vector<2x128xf32>
      %43 = arith.divf %39, %42 : vector<2x128xf32>
      %c0_25 = arith.constant 0 : index
      %c0_26 = arith.constant 0 : index
      %44 = vector.load %arg6[%c0_25, %c0_26] : memref<2x128xf32, #tpu.memory_space<vmem>>, vector<2x128xf32>
      tpu.vector_store %arg6[%c0_25, %c0_26], %43 {strides = array<i32>} : memref<2x128xf32, #tpu.memory_space<vmem>>, vector<2x128xf32>,
    } else {
    }
    return
  }
  func.func @transform_0(%arg0: i32, %arg1: i32) -> i32 {
    %c0_i32 = arith.constant 0 : i32
    %c0_i32_0 = arith.constant 0 : i32
    return %c0_i32 : i32
  }
  func.func @transform_1(%arg0: i32, %arg1: i32) -> (i32, i32, i32) {
    %c0_i32 = arith.constant 0 : i32
    %c0_i32_0 = arith.constant 0 : i32
    return %arg0, %arg1, %c0_i32 : i32, i32, i32
  }
  func.func @transform_2(%arg0: i32, %arg1: i32) -> (i32, i32) {
    %c0_i32 = arith.constant 0 : i32
    %c0_i32_0 = arith.constant 0 : i32
    %c0_i32_1 = arith.constant 0 : i32
    return %c0_i32, %c0_i32_0 : i32, i32
  }
  func.func @transform_3(%arg0: i32, %arg1: i32) -> (i32, i32) {
    %c0_i32 = arith.constant 0 : i32
    %c0_i32_0 = arith.constant 0 : i32
    return %arg0, %c0_i32 : i32, i32
  }
  func.func @transform_4(%arg0: i32, %arg1: i32) -> (i32, i32) {
    %c0_i32 = arith.constant 0 : i32
    %c0_i32_0 = arith.constant 0 : i32
    return %arg0, %c0_i32 : i32, i32
  }
  func.func @transform_5(%arg0: i32, %arg1: i32) -> (i32, i32) {
    %c0_i32 = arith.constant 0 : i32
    %c0_i32_0 = arith.constant 0 : i32
    return %arg0, %c0_i32 : i32, i32
  }
}

</mosaic_0001>

<bundles_post_ra>
// kernel: tpu_custom_call.1
= control target key start
LH: loop header
LB: loop body
LE: loop exit
PB: predicated region body
PF: predicated region fallthrough
CT: control target
= control target key end

     0   :  { %12 = vsyncpa [#allocation5], 0  ;;  %s425_s0 = inlined_call_operand.<no memory space> [shape: f32[1], index: 0, kind: input, shape index: {}]   ;;  %s426_s1 = inlined_call_operand.hbm [shape: f32[2,8,32], index: 1, kind: input, shape index: {}]   ;;  %s427_s2 = inlined_call_operand.hbm [shape: bf16[32,128], index: 2, kind: input, shape index: {}]   ;;  %s428_s3 = inlined_call_operand.hbm [shape: f32[2,128], index: 3, kind: output, shape index: {0}]   ;;  %s429_s4 = inlined_call_operand.hbm [shape: f32[2,128], index: 4, kind: output, shape index: {1}]   ;;  %s430_s5 = inlined_call_operand.hbm [shape: f32[2,32], index: 5, kind: output, shape index: {2}]  }
   0x1   :  { %13 = vsyncpa [#allocation8], 0 }
   0x2   :  { %14 = vsyncpa [#allocation6], 0 }
   0x3   :  { %15 = vsyncpa [#allocation11], 0  ;;  %s359_s18 = smov [#allocation4]  }
   0x4   :  { %s23_s19 = sshll.u32 %s359_s18, 4  ;;  %s24_s19 = int_to_ptr.vmem [resolvable:$true] %s23_s19 }
   0x5   :  { %s259_s20 = scalar_lea.vmem %s24_s19, 256  ;;  %p264_p1 = scmp.lt.s32.totalorder %s24_s19, %s24_s19 }
   0x6   :  { %p260_p0 = scmp.ne.s32.totalorder %s24_s19, %s259_s20  ;;  %p265_p2 = scmp.lt.s32.totalorder %s259_s20, %s259_s20 }
   0x8   :  { %p266_p3 = por %p265_p2, %p264_p1 }
   0xa   :  { %p267_p4 = pnand %p266_p3, %p260_p0 }
   0xc   :  { %270 = shalt.err (!%p267_p4)
}
   0xd   :  { %s360_s21 = smov 128   ;;  %s361_s22 = smov 8  }
   0xe   :  { %29 = dma.hbm_to_vmem [thread:$0]  %s426_s1, 256, %s24_s19, [#allocation5], %s360_s21, %s360_s21, %s361_s22  }
   0xf   :  { %s362_s25 = smov [#allocation7]  }
  0x10   :  { %s35_s26 = sshll.u32 %s362_s25, 4  ;;  %s36_s26 = int_to_ptr.vmem [resolvable:$true] %s35_s26 }
  0x11   :  { %s279_s27 = scalar_lea.vmem %s36_s26, 256  ;;  %p284_p6 = scmp.lt.s32.totalorder %s36_s26, %s36_s26 }
  0x12   :  { %p280_p5 = scmp.ne.s32.totalorder %s36_s26, %s279_s27  ;;  %p285_p7 = scmp.lt.s32.totalorder %s279_s27, %s279_s27 }
  0x14   :  { %p286_p8 = por %p285_p7, %p284_p6 }
  0x16   :  { %p287_p9 = pnand %p286_p8, %p280_p5 }
  0x18   :  { %290 = shalt.err (!%p287_p9)
}
  0x19   :  { %s363_s28 = smov 64   ;;  %s364_s29 = smov 4  }
  0x1a   :  { %41 = dma.hbm_to_vmem [thread:$0]  %s427_s2, 256, %s36_s26, [#allocation8], %s363_s28, %s363_s28, %s364_s29  }
  0x1b   :  { %351 = dma.done.wait [#allocation5], 256  }
  0x1c   :  { %352 = vsyncadd [#allocation5], 4294967040 }
  0x1d   :  { %353 = dma.done.wait [#allocation8], 256  }
  0x1e   :  { %354 = vsyncadd [#allocation8], 4294967040  ;;  %vm53_vm0 = vcmask 254976   ;;  %v365_v0 = vmov 0.0   ;;  %vm58_vm1 = vcmask 261120   ;;  %v55_v1 = vld [vmem:[#allocation4] sm:$0xff]  ;;  %v158_v31 = vlaneseq }
  0x1f   :  { %54 = vst.msk [vmem:[#allocation2] sm:$0x3] %vm53_vm0, %v365_v0  ;;  %224 = vmatprep.subr.bf16.mxu0 %v365_v0  ;;  %v56_v2 = vld [vmem:[#allocation4 + $0x8] sm:$0xff]  ;;  %v59_v3 = vsel %vm58_vm1, %v55_v1, 0.0  ;;  %vm75_vm2 = vcmask 1041409   ;;  %v243_v24 = vld [vmem:[#allocation7 + $0x8] sm:$0xff]   ;;  %v155_v33 = vstv %s425_s0 }
  0x20   :  { %v66_v4 = vsel %vm58_vm1, %v56_v2, 0.0  ;;  %v60_v5 = vrot.slane %v59_v3, 4  ;;  %vm366_vm3 = vmmov 0   ;;  %225 = vmatpush3.bf16.msra.mxu0 %v243_v24  ;;  %v244_v25 = vld [vmem:[#allocation7] sm:$0xff]   ;;  %v159_v32 = vand.u32 127, %v158_v31  ;;  %s367_s7 = smov [#allocation9]  }
  0x21   :  { %v67_v6 = vrot.slane %v66_v4, 4  ;;  %228 = vmatprep.mubr.msk.bf16.mxu0 %vm366_vm3, %v365_v0  ;;  %226 = vmatprep.subr.bf16.mxu0 %v365_v0  ;;  %vm162_vm5 = vcmask 1041408   ;;  %s181_s0 = sshll.u32 %s367_s7, 4  ;;  %s182_s0 = int_to_ptr.vmem [resolvable:$true] %s181_s0 }
  0x22   :  { %v61_v7 = vadd.f32 %v60_v5, %v59_v3  ;;  %vm160_vm4 = vcmp.lt.s32.totalorder %v159_v32, 8  ;;  %s291_s8 = scalar_lea.vmem %s182_s0, 32  ;;  %p296_p11 = scmp.lt.s32.totalorder %s182_s0, %s182_s0 }
  0x23   :  { %v68_v8 = vadd.f32 %v67_v6, %v66_v4  ;;  %p292_p10 = scmp.ne.s32.totalorder %s182_s0, %s291_s8  ;;  %p297_p12 = scmp.lt.s32.totalorder %s291_s8, %s291_s8 }
  0x24   :  { %v62_v9 = vrot.slane %v61_v7, 2  ;;  %227 = vmatpush3.bf16.msra.mxu0 %v244_v25 }
  0x25   :  { %v69_v10 = vrot.slane %v68_v8, 2  ;;  %p298_p13 = por %p297_p12, %p296_p11 }
  0x26   :  { %v63_v11 = vadd.f32 %v62_v9, %v61_v7  ;;  %v57_v15 = vld [vmem:[#allocation2] sm:$0x3] }
  0x27   :  { %v70_v12 = vadd.f32 %v69_v10, %v68_v8  ;;  %p299_p0 = pnand %p298_p13, %p292_p10 }
  0x28   :  { %v64_v13 = vrot.slane %v63_v11, 1 }
  0x29   :  { %v71_v14 = vrot.slane %v70_v12, 1 }
  0x2a   :  { %v65_v16 = vadd.f32 %v64_v13, %v63_v11 }
  0x2b   :  { %v72_v17 = vadd.f32 %v71_v14, %v70_v12 }
  0x2d   :  { %v76_v18 = vsel %vm75_vm2, %v72_v17, %v65_v16 }
  0x2e   :  { %v78_v19 = vadd.f32 %v76_v18, %v57_v15 }
  0x30   :  { %80 = vst.msk [vmem:[#allocation2] sm:$0x3] %vm53_vm0, %v78_v19 }
  0x37   :  { %v84_v20 = vld [vmem:[#allocation2] sm:$0x3] }
  0x38   :  { %v85_v21 = vmul.f32 0.125, %v84_v20 }
  0x3a   :  { %v87_v22 = vmul.f32 %v85_v21, %v85_v21  ;;  %86 = vst.msk [vmem:[#allocation12] sm:$0x3] %vm53_vm0, %v85_v21 }
  0x3c   :  { %v88_v23 = vsel %vm53_vm0, %v87_v22, 0.0 }
  0x3d   :  { %89 = vadd.xlane.f32.xlu0 %v88_v23 }
  0xc6   :  { %v90_v26 = vpop.xlane.xlu0 %89 }
  0xc7   :  { %v91_v27 = vadd.f32 1e-12, %v90_v26 }
  0xc9   :  { %245 = vrsqrt.f32 %v91_v27 }
  0xd6   :  { %v246_v28 = vpop.eup %245 }
  0xd7   :  { %v93_v29 = vmul.f32 %v246_v28, %v85_v21 }
  0xd9   :  { %v95_v30 = vpack.c.bf16 %v93_v29, %v93_v29 }
  0xdb   :  { %229 = vmatmul.mubr.msk.bf16.vlgmr.msra.gmra.mxu0 %vm58_vm1, %v95_v30 }
 0x19b   :  { %v149_v34 = vpop.f32.mrf.mxu0 }
 0x19c   :  { %v156_v35 = vmul.f32 %v155_v33, %v149_v34 }
 0x19d   :  { %v230_v36 = vpop.f32.mrf.mxu0 }
 0x19e   :  { %157 = vst [vmem:[#allocation9] sm:$0x3] %v156_v35  ;;  %v161_v37 = vsel %vm160_vm4, %v156_v35, -inf }
 0x19f   :  { %v152_v38 = vpop.f32.mrf.mxu0  ;;  %v163_v39 = vsel %vm162_vm5, %v161_v37, -inf }
 0x1a0   :  { %164 = vmax.xlane.f32.xlu0 %v163_v39 }
 0x1a1   :  { %v231_v40 = vpop.f32.mrf.mxu0 }
 0x229   :  { %v165_v41 = vpop.xlane.xlu0 %164 }
 0x22a   :  { %v166_v42 = vsub.f32 %v161_v37, %v165_v41 }
 0x22c   :  { %v167_v43 = vmul.f32 1.442695, %v166_v42 }
 0x22e   :  { %247 = vpow2.f32 %v167_v43 }
 0x23b   :  { %v248_v44 = vpop.eup %247 }
 0x23c   :  { %v169_v45 = vsel %vm162_vm5, %v248_v44, 0.0 }
 0x23d   :  { %170 = vadd.xlane.f32.xlu1 %v169_v45 }
 0x23e   :  { %302 = shalt.err (!%p299_p0)
}
 0x23f   :  { %184 = dma.vmem_to_hbm [thread:$0]  %s182_s0, 32, %s428_s3, [#allocation6]  }
 0x240   :  { %s368_s11 = smov [#allocation10]   ;;  %s369_s13 = smov [#allocation12]  }
 0x241   :  { %s191_s12 = sshll.u32 %s368_s11, 4  ;;  %s201_s14 = sshll.u32 %s369_s13, 4  ;;  %s192_s12 = int_to_ptr.vmem [resolvable:$true] %s191_s12  ;;  %s202_s14 = int_to_ptr.vmem [resolvable:$true] %s201_s14 }
 0x242   :  { %s311_s15 = scalar_lea.vmem %s192_s12, 32  ;;  %p316_p2 = scmp.lt.s32.totalorder %s192_s12, %s192_s12 }
 0x243   :  { %p312_p1 = scmp.ne.s32.totalorder %s192_s12, %s311_s15  ;;  %p317_p3 = scmp.lt.s32.totalorder %s311_s15, %s311_s15 }
 0x245   :  { %p318_p4 = por %p317_p3, %p316_p2 }
 0x247   :  { %p319_p5 = pnand %p318_p4, %p312_p1 }
 0x2c6   :  { %v171_v46 = vpop.xlane.xlu1 %170 }
 0x2c7   :  { %249 = vrcp.f32 %v171_v46 }
 0x2d4   :  { %v250_v47 = vpop.eup %249 }
 0x2d5   :  { %v173_v48 = vmul.f32 %v250_v47, %v248_v44 }
 0x2d7   :  { %174 = vst [vmem:[#allocation10] sm:$0x3] %v173_v48 }
 0x2d8   :  { %322 = shalt.err (!%p319_p5)
}
 0x2d9   :  { %194 = dma.vmem_to_hbm [thread:$0]  %s192_s12, 32, %s429_s4, [#allocation11]  }
 0x2da   :  { %s331_s17 = scalar_lea.vmem %s202_s14, 32  ;;  %p336_p7 = scmp.lt.s32.totalorder %s202_s14, %s202_s14 }
 0x2db   :  { %p332_p6 = scmp.ne.s32.totalorder %s202_s14, %s331_s17  ;;  %p337_p8 = scmp.lt.s32.totalorder %s331_s17, %s331_s17 }
 0x2dd   :  { %p338_p9 = por %p337_p8, %p336_p7 }
 0x2df   :  { %p339_p10 = pnand %p338_p9, %p332_p6 }
 0x2e1   :  { %342 = shalt.err (!%p339_p10)
}
 0x2e2   :  { %204 = dma.vmem_to_hbm [thread:$0]  %s202_s14, 32, %s430_s5, [#allocation11]  }
 0x2e3   :  { %355 = dma.done.wait [#allocation6], 32  }
 0x2e4   :  { %356 = vsyncadd [#allocation6], 4294967264 }
 0x2e5   :  { %357 = dma.done.wait [#allocation11], 64  }
 0x2e6   :  { %358 = vsyncadd [#allocation11], 4294967232 }
 0x2e7   :  { %214 = vsyncpa [#allocation5], 1 }
 0x2e8   :  { %215 = vsyncpa [#allocation8], 1 }
 0x2e9   :  { %216 = vsyncpa [#allocation6], 1 }
 0x2ea   :  { %217 = vsyncpa [#allocation11], 1 }

</bundles_post_ra>
